<compile_context>
chip_gen: v7x
topology: tpu7x:2x2x1
jax: 0.10.0
libtpu: 0.0.40
codegen_flags: <defaults>
</compile_context>

<pallas_src>
import jax
import jax.numpy as jnp
from jax.experimental import pallas as pl
from jax.experimental.pallas import tpu as pltpu


def _attn_pool_kernel(pooled_ref, query_ref, w_pool_ref, w_q_ref, o_ref):
    """Fused attention readout over the k sort-pooled nodes of each graph tile."""
    pooled = pooled_ref[...].astype(jnp.float32)   # (tb, k, H)
    q = query_ref[...].astype(jnp.float32)         # (tb, H)
    wp = w_pool_ref[...].astype(jnp.float32)       # (1, H)  -> applied to pooled half of concat
    wq = w_q_ref[...].astype(jnp.float32)          # (1, H)  -> applied to query half of concat

    # Linear(2H -> 1, bias=False) on concat([pooled, query]) == <pooled, wp> + <query, wq>
    s_pool = jnp.sum(pooled * wp[None, :, :], axis=-1)            # (tb, k)   lane reduction
    s_q = jnp.sum(q * wq, axis=-1, keepdims=True)                 # (tb, 1)
    s = s_pool + s_q                                              # (tb, k)

    # LeakyReLU (PyTorch default negative_slope = 0.01)
    s = jnp.where(s > 0, s, 0.01 * s)

    # softmax over the k axis
    s = s - jnp.max(s, axis=-1, keepdims=True)
    e = jnp.exp(s)
    attn = e / jnp.sum(e, axis=-1, keepdims=True)                 # (tb, k)

    # weighted sum over k  -> (tb, H)
    out = jnp.sum(pooled * attn[:, :, None], axis=1)
    o_ref[...] = out.astype(o_ref.dtype)


def _choose_tile_b(batch, k, hidden, dtype_bytes):
    """VMEM-budgeted batch tile: blocks fit v7x's 32 MiB scoped limit with headroom."""
    sublane = {4: 8, 2: 16, 1: 32}.get(dtype_bytes, 8)
    budget = 16 << 20  # bytes of block data; x2 double-buffering accounted below
    # per batch-row bytes across double-buffered pooled + query + output blocks
    per_row = 2 * (k * hidden + hidden + hidden) * dtype_bytes
    tile = max(1, budget // max(per_row, 1))
    if tile >= batch:
        return batch  # full-dim block: always layout-legal, single step for tiny batches
    tile = max(sublane, (tile // sublane) * sublane)
    # make sure there are >= 2 grid steps so megacore (v7x) / pipelining can engage
    while pl.cdiv(batch, tile) < 2 and tile > sublane:
        tile = max(sublane, ((tile // 2) // sublane) * sublane)
    return min(tile, batch)


def graph_sort_pooling_forward(h, attention_query, w_attn, *, k=5, tile_b=None):
    """
    h:                (batch, num_nodes, hidden) dense padded node features
                      (each graph's nodes along axis 1).
    attention_query:  (batch, hidden)
    w_attn:           (1, 2*hidden)  Linear weight of the attention layer (no bias).
    returns:          (batch, hidden)
    """
    batch, num_nodes, hidden = h.shape
    assert num_nodes >= k, "each graph must have at least k nodes"
    assert attention_query.shape == (batch, hidden)
    assert w_attn.shape == (1, 2 * hidden)

    # ---- SortPooling (dgl.nn.SortPooling semantics) ----------------------------------
    # TODO(synk): per-node feature sort + data-dependent top-k node gather over ragged DGL
    # batched graphs has no clean Pallas TPU equivalent; done in plain JAX on a dense
    # padded node tensor (XLA sort/top_k/gather), then the dense readout is fused below.
    feat = jnp.sort(h, axis=-1)                         # ascending sort per node
    _, idx = jax.lax.top_k(feat[..., -1], k)            # top-k nodes by last feature (desc)
    pooled = jnp.take_along_axis(feat, idx[..., None], axis=1)   # (batch, k, hidden)

    # ---- Fused attention readout (Pallas) ---------------------------------------------
    w_pool = w_attn[:, :hidden]                          # (1, hidden)
    w_q = w_attn[:, hidden:]                             # (1, hidden)

    dtype_bytes = jnp.dtype(h.dtype).itemsize
    if tile_b is None:
        tile_b = _choose_tile_b(batch, k, hidden, dtype_bytes)
    grid = (pl.cdiv(batch, tile_b),)

    return pl.pallas_call(
        _attn_pool_kernel,
        out_shape=jax.ShapeDtypeStruct((batch, hidden), h.dtype),
        grid_spec=pltpu.PrefetchScalarGridSpec(
            num_scalar_prefetch=0,
            grid=grid,
            in_specs=[
                # pooled: last two block dims (k, hidden) equal full dims -> layout-legal
                pl.BlockSpec((tile_b, k, hidden), lambda i: (i, 0, 0)),
                pl.BlockSpec((tile_b, hidden), lambda i: (i, 0)),
                # weights: resident (same block every step)
                pl.BlockSpec((1, hidden), lambda i: (0, 0)),
                pl.BlockSpec((1, hidden), lambda i: (0, 0)),
            ],
            out_specs=pl.BlockSpec((tile_b, hidden), lambda i: (i, 0)),
        ),
        compiler_params=pltpu.CompilerParams(
            dimension_semantics=("parallel",),       # shard batch tiles across TCs (v7x)
            vmem_limit_bytes=32 << 20,               # explicit, fits v5e/v6e/v7x
        ),
    )(pooled, attention_query, w_pool, w_q)


def _reference(h, attention_query, w_attn, k):
    """Pure-JAX reference with the PyTorch module's semantics."""
    batch, _, hidden = h.shape
    feat = jnp.sort(h, axis=-1)
    _, idx = jax.lax.top_k(feat[..., -1], k)
    pooled = jnp.take_along_axis(feat, idx[..., None], axis=1)            # (b, k, H)
    q_rep = jnp.broadcast_to(attention_query[:, None, :], (batch, k, hidden))
    cat = jnp.concatenate([pooled, q_rep], axis=-1)                        # (b, k, 2H)
    scores = jnp.einsum("bkc,c->bk", cat, w_attn[0])
    scores = jnp.where(scores > 0, scores, 0.01 * scores)                  # LeakyReLU
    attn = jax.nn.softmax(scores, axis=1)
    return jnp.sum(pooled * attn[..., None], axis=1)                       # (b, H)


if __name__ == "__main__":
    key = jax.random.PRNGKey(0)
    k1, k2, k3 = jax.random.split(key, 3)

    # Small shapes consistent with the module: hidden_size=32, k=5,
    # batch=4 graphs with 16 (padded/dense) nodes each.
    batch, num_nodes, hidden, k = 4, 16, 32, 5
    h = jax.random.normal(k1, (batch, num_nodes, hidden), dtype=jnp.float32)
    attention_query = jax.random.normal(k2, (batch, hidden), dtype=jnp.float32)
    w_attn = (jax.random.normal(k3, (1, 2 * hidden), dtype=jnp.float32)
              / jnp.sqrt(2.0 * hidden))

    out = graph_sort_pooling_forward(h, attention_query, w_attn, k=k)
    out = jax.block_until_ready(out)

    ref = _reference(h, attention_query, w_attn, k)
    assert out.shape == (batch, hidden), out.shape
    assert jnp.allclose(out, ref, rtol=1e-5, atol=1e-5), "mismatch vs reference"

    print("KERNEL_OK")
</pallas_src>

<mosaic_0001>
module attributes {stable_mosaic.version = 11 : i64} {
  func.func @_attn_pool_kernel(%arg0: i32, %arg1: memref<4x5x32xf32, #tpu.memory_space<vmem>>, %arg2: memref<4x32xf32, #tpu.memory_space<vmem>>, %arg3: memref<1x32xf32, #tpu.memory_space<vmem>>, %arg4: memref<1x32xf32, #tpu.memory_space<vmem>>, %arg5: memref<4x32xf32, #tpu.memory_space<vmem>>) attributes {dimension_semantics = [#tpu.dimension_semantics<parallel>], iteration_bounds = array<i64: 1>, scalar_prefetch = 0 : i64, scratch_operands = 0 : i64, tpu.core_type = #tpu.core_type<tc>, window_params = [{transform_indices = @transform_0, window_bounds = array<i64: 4, 5, 32>}, {transform_indices = @transform_1, window_bounds = array<i64: 4, 32>}, {pipeline_mode = #tpu.pipeline_mode<synchronous>, transform_indices = @transform_2, window_bounds = array<i64: 1, 32>}, {pipeline_mode = #tpu.pipeline_mode<synchronous>, transform_indices = @transform_3, window_bounds = array<i64: 1, 32>}, {transform_indices = @transform_4, window_bounds = array<i64: 4, 32>}]} {
    %c0 = arith.constant 0 : index
    %c0_0 = arith.constant 0 : index
    %c0_1 = arith.constant 0 : index
    %0 = vector.load %arg1[%c0, %c0_0, %c0_1] : memref<4x5x32xf32, #tpu.memory_space<vmem>>, vector<4x5x32xf32>
    %c0_2 = arith.constant 0 : index
    %c0_3 = arith.constant 0 : index
    %1 = vector.load %arg2[%c0_2, %c0_3] : memref<4x32xf32, #tpu.memory_space<vmem>>, vector<4x32xf32>
    %c0_4 = arith.constant 0 : index
    %c0_5 = arith.constant 0 : index
    %2 = vector.load %arg3[%c0_4, %c0_5] : memref<1x32xf32, #tpu.memory_space<vmem>>, vector<1x32xf32>
    %c0_6 = arith.constant 0 : index
    %c0_7 = arith.constant 0 : index
    %3 = vector.load %arg4[%c0_6, %c0_7] : memref<1x32xf32, #tpu.memory_space<vmem>>, vector<1x32xf32>
    %4 = vector.shape_cast %2 : vector<1x32xf32> to vector<1x1x32xf32>
    %5 = vector.broadcast %4 : vector<1x1x32xf32> to vector<4x5x32xf32>
    %6 = arith.mulf %0, %5 : vector<4x5x32xf32>
    %cst = arith.constant dense<0.000000e+00> : vector<4x5xf32>
    %7 = vector.multi_reduction <add>, %6, %cst [2] : vector<4x5x32xf32> to vector<4x5xf32>
    %8 = vector.broadcast %3 : vector<1x32xf32> to vector<4x32xf32>
    %9 = arith.mulf %1, %8 : vector<4x32xf32>
    %cst_8 = arith.constant dense<0.000000e+00> : vector<4xf32>
    %10 = vector.multi_reduction <add>, %9, %cst_8 [1] : vector<4x32xf32> to vector<4xf32>
    %11 = vector.shape_cast %10 : vector<4xf32> to vector<4x1xf32>
    %12 = vector.broadcast %11 : vector<4x1xf32> to vector<4x5xf32>
    %13 = arith.addf %7, %12 : vector<4x5xf32>
    %cst_9 = arith.constant 0.000000e+00 : f32
    %14 = vector.broadcast %cst_9 : f32 to vector<4x5xf32>
    %15 = arith.cmpf ogt, %13, %14 : vector<4x5xf32>
    %cst_10 = arith.constant 0.00999999977 : f32
    %16 = vector.broadcast %cst_10 : f32 to vector<4x5xf32>
    %17 = arith.mulf %16, %13 : vector<4x5xf32>
    %18 = arith.select %15, %13, %17 : vector<4x5xi1>, vector<4x5xf32>
    %cst_11 = arith.constant dense<0xFF800000> : vector<4xf32>
    %19 = vector.multi_reduction <maximumf>, %18, %cst_11 [1] : vector<4x5xf32> to vector<4xf32>
    %20 = vector.shape_cast %19 : vector<4xf32> to vector<4x1xf32>
    %21 = vector.broadcast %20 : vector<4x1xf32> to vector<4x5xf32>
    %22 = arith.subf %18, %21 : vector<4x5xf32>
    %23 = math.exp %22 : vector<4x5xf32>
    %cst_12 = arith.constant dense<0.000000e+00> : vector<4xf32>
    %24 = vector.multi_reduction <add>, %23, %cst_12 [1] : vector<4x5xf32> to vector<4xf32>
    %25 = vector.shape_cast %24 : vector<4xf32> to vector<4x1xf32>
    %26 = vector.broadcast %25 : vector<4x1xf32> to vector<4x5xf32>
    %27 = arith.divf %23, %26 : vector<4x5xf32>
    %28 = vector.shape_cast %27 : vector<4x5xf32> to vector<4x5x1xf32>
    %29 = vector.broadcast %28 : vector<4x5x1xf32> to vector<4x5x32xf32>
    %30 = arith.mulf %0, %29 : vector<4x5x32xf32>
    %cst_13 = arith.constant dense<0.000000e+00> : vector<4x32xf32>
    %31 = vector.multi_reduction <add>, %30, %cst_13 [1] : vector<4x5x32xf32> to vector<4x32xf32>
    %c0_14 = arith.constant 0 : index
    %c0_15 = arith.constant 0 : index
    %32 = vector.load %arg5[%c0_14, %c0_15] : memref<4x32xf32, #tpu.memory_space<vmem>>, vector<4x32xf32>
    tpu.vector_store %arg5[%c0_14, %c0_15], %31 {strides = array<i32>} : memref<4x32xf32, #tpu.memory_space<vmem>>, vector<4x32xf32>,
    return
  }
  func.func @transform_0(%arg0: i32) -> (i32, i32, i32) {
    %c0_i32 = arith.constant 0 : i32
    %c0_i32_0 = arith.constant 0 : i32
    %c0_i32_1 = arith.constant 0 : i32
    return %arg0, %c0_i32, %c0_i32_0 : i32, i32, i32
  }
  func.func @transform_1(%arg0: i32) -> (i32, i32) {
    %c0_i32 = arith.constant 0 : i32
    %c0_i32_0 = arith.constant 0 : i32
    return %arg0, %c0_i32 : i32, i32
  }
  func.func @transform_2(%arg0: i32) -> (i32, i32) {
    %c0_i32 = arith.constant 0 : i32
    %c0_i32_0 = arith.constant 0 : i32
    %c0_i32_1 = arith.constant 0 : i32
    return %c0_i32, %c0_i32_0 : i32, i32
  }
  func.func @transform_3(%arg0: i32) -> (i32, i32) {
    %c0_i32 = arith.constant 0 : i32
    %c0_i32_0 = arith.constant 0 : i32
    %c0_i32_1 = arith.constant 0 : i32
    return %c0_i32, %c0_i32_0 : i32, i32
  }
  func.func @transform_4(%arg0: i32) -> (i32, i32) {
    %c0_i32 = arith.constant 0 : i32
    %c0_i32_0 = arith.constant 0 : i32
    return %arg0, %c0_i32 : i32, i32
  }
}

</mosaic_0001>

<bundles_post_ra>
// kernel: tpu_custom_call.1
= control target key start
LH: loop header
LB: loop body
LE: loop exit
PB: predicated region body
PF: predicated region fallthrough
CT: control target
= control target key end

     0   :  { %vm55_vm0 = vcmask 257024   ;;  %vm35_vm1 = vcmask 258048   ;;  %s490_s0 = inlined_call_operand.vmem [shape: f32[4,5,32], index: 0, kind: input, shape index: {}]   ;;  %s491_s1 = inlined_call_operand.vmem [shape: f32[4,32], index: 1, kind: input, shape index: {}]   ;;  %s492_s2 = inlined_call_operand.vmem [shape: f32[1,32], index: 2, kind: input, shape index: {}]   ;;  %s493_s3 = inlined_call_operand.vmem [shape: f32[1,32], index: 3, kind: input, shape index: {}]   ;;  %s494_s4 = inlined_call_operand.hbm [shape: f32[4,32], index: 4, kind: output, shape index: {}]  }
   0x1   :  { %v22_v0 = vld [vmem:[%s491_s1] sm:$0xf]  ;;  %v399_v3 = vld [vmem:[%s490_s0 + $0x8] sm:$0x1f]  ;;  %v407_v5 = vld [vmem:[%s490_s0 + $0x10] sm:$0x1f] }
   0x2   :  { %v318_v1 = vld [vmem:[%s493_s3] ss:$0 sm:$0xff]  ;;  %v419_v9 = vld [vmem:[%s490_s0 + $0x18] sm:$0x1f] }
   0x3   :  { %v54_v2 = vmul.f32 %v318_v1, %v22_v0  ;;  %v317_v4 = vld [vmem:[%s492_s2] ss:$0 sm:$0xff] }
   0x4   :  { %v32_v6 = vmul.f32 %v317_v4, %v399_v3  ;;  %v33_v7 = vmul.f32 %v317_v4, %v407_v5  ;;  %v414_v8 = vld [vmem:[%s490_s0] sm:$0x1f] }
   0x5   :  { %9 = vsyncpa [#allocation3], 0  ;;  %v56_v10 = vsel %vm55_vm0, %v54_v2, 0.0  ;;  %v31_v11 = vmul.f32 %v317_v4, %v414_v8  ;;  %v34_v14 = vmul.f32 %v317_v4, %v419_v9  ;;  %v60_v17 = vlaneseq  ;;  %s364_s0 = smov [#allocation2]  }
   0x6   :  { %57 = vadd.xlane.f32.xlu0 %v56_v10  ;;  %v39_v12 = vsel %vm35_vm1, %v32_v6, 0.0  ;;  %v42_v15 = vsel %vm35_vm1, %v33_v7, 0.0  ;;  %v363_v21 = vmov 0   ;;  %vm130_vm6 = vcmask 1041409   ;;  %s309_s2 = sshll.u32 %s364_s0, 4  ;;  %s310_s2 = int_to_ptr.vmem [resolvable:$true] %s309_s2 }
   0x7   :  { %40 = vadd.xlane.f32.xlu1 %v39_v12  ;;  %v36_v13 = vsel %vm35_vm1, %v31_v11, 0.0  ;;  %v45_v16 = vsel %vm35_vm1, %v34_v14, 0.0  ;;  %v61_v18 = vshrl.u32 %v60_v17, 7  ;;  %v113_v19 = vand.u32 127, %v60_v17  ;;  %322 = vset.pattern.permute.xlu0 %v363_v21  ;;  %s339_s27 = scalar_lea.vmem %s310_s2, 64  ;;  %p344_p1 = scmp.lt.s32.totalorder %s310_s2, %s310_s2 }
   0x8   :  { %321 = vset.pattern.permute.xlu1 %v363_v21  ;;  %vm132_vm7 = vcmask 1042434   ;;  %vm134_vm8 = vcmask 1043459   ;;  %vm137_vm9 = vcmask 35840   ;;  %p340_p0 = scmp.ne.s32.totalorder %s310_s2, %s339_s27  ;;  %p345_p2 = scmp.lt.s32.totalorder %s339_s27, %s339_s27 }
   0x9   :  { %v428_v20 = vsub.s32 %v113_v19, %v61_v18  ;;  %v430_v22 = vsub.s32 1, %v61_v18  ;;  %v432_v23 = vsub.s32 0, %v61_v18  ;;  %v434_v25 = vsub.s32 2, %v61_v18 }
   0xa   :  { %37 = vadd.xlane.f32.xlu0 %v36_v13  ;;  %v438_v30 = vsub.s32 3, %v61_v18  ;;  %p346_p3 = por %p345_p2, %p344_p1 }
   0xb   :  { %43 = vadd.xlane.f32.xlu1 %v42_v15 }
   0xc   :  { %p347_p4 = pnand %p346_p3, %p340_p0 }
   0xe   :  { %46 = vadd.xlane.f32.xlu0 %v45_v16 }
  0x93   :  { %v58_v24 = vpop.xlane.xlu0 %57 }
  0x94   :  { %v67_v26 = vrot.slane %v58_v24, %v430_v22  ;;  %v41_v27 = vpop.xlane.xlu1 %40  ;;  %v63_v29 = vrot.slane %v58_v24, %v432_v23  ;;  %v71_v31 = vrot.slane %v58_v24, %v434_v25  ;;  %v75_v39 = vrot.slane %v58_v24, %v438_v30 }
  0x96   :  { %v81_v28 = vadd.f32 %v67_v26, %v41_v27 }
  0x97   :  { %v38_v32 = vpop.xlane.xlu0 %37 }
  0x98   :  { %v89_v33 = vmul.f32 0.01, %v81_v28  ;;  %v44_v34 = vpop.xlane.xlu1 %43  ;;  %v80_v35 = vadd.f32 %v63_v29, %v38_v32  ;;  %vm85_vm2 = vcmp.gt.f32.partialorder %v81_v28, 0.0 }
  0x99   :  { %v82_v36 = vadd.f32 %v71_v31, %v44_v34 }
  0x9a   :  { %v88_v37 = vmul.f32 0.01, %v80_v35  ;;  %v93_v38 = vsel %vm85_vm2, %v81_v28, %v89_v33  ;;  %vm84_vm3 = vcmp.gt.f32.partialorder %v80_v35, 0.0 }
  0x9b   :  { %104 = vperm.xlu0 %322, %v93_v38   ;;  %v47_v40 = vpop.xlane.xlu0 %46  ;;  %v90_v41 = vmul.f32 0.01, %v82_v36  ;;  %vm86_vm4 = vcmp.gt.f32.partialorder %v82_v36, 0.0 }
  0x9c   :  { %v83_v42 = vadd.f32 %v75_v39, %v47_v40  ;;  %v92_v43 = vsel %vm84_vm3, %v80_v35, %v88_v37 }
  0x9d   :  { %101 = vperm.xlu1 %321, %v92_v43   ;;  %v94_v45 = vsel %vm86_vm4, %v82_v36, %v90_v41 }
  0x9e   :  { %v91_v44 = vmul.f32 0.01, %v83_v42  ;;  %vm87_vm5 = vcmp.gt.f32.partialorder %v83_v42, 0.0 }
  0xa0   :  { %v95_v46 = vsel %vm87_vm5, %v83_v42, %v91_v44 }
  0xa1   :  { %107 = vperm.xlu1 %321, %v94_v45  }
  0xa5   :  { %110 = vperm.xlu1 %321, %v95_v46  }
 0x11a   :  { %v105_v48 = vpop.permute.xlu0 %104 }
 0x11b   :  { %v121_v52 = vrot.slane %v105_v48, %v428_v20 }
 0x11c   :  { %v102_v47 = vpop.permute.xlu1 %101 }
 0x11d   :  { %v117_v50 = vrot.slane %v102_v47, %v428_v20 }
 0x11f   :  { %v131_v54 = vsel %vm130_vm6, %v121_v52, %v117_v50 }
 0x120   :  { %v108_v49 = vpop.permute.xlu1 %107 }
 0x121   :  { %v125_v51 = vrot.slane %v108_v49, %v428_v20 }
 0x123   :  { %v133_v56 = vsel %vm132_vm7, %v125_v51, %v131_v54 }
 0x124   :  { %v111_v53 = vpop.permute.xlu1 %110 }
 0x125   :  { %v129_v55 = vrot.slane %v111_v53, %v428_v20 }
 0x127   :  { %v135_v57 = vsel %vm134_vm8, %v129_v55, %v133_v56 }
 0x128   :  { %v138_v58 = vsel %vm137_vm9, %v135_v57, -inf }
 0x129   :  { %139 = vmax.xlane.f32.xlu1 %v138_v58 }
 0x1b6   :  { %v140_v59 = vpop.xlane.xlu1 %139 }
 0x1b7   :  { %v145_v60 = vrot.slane %v140_v59, %v432_v23  ;;  %v149_v61 = vrot.slane %v140_v59, %v430_v22  ;;  %v153_v62 = vrot.slane %v140_v59, %v434_v25  ;;  %v157_v2 = vrot.slane %v140_v59, %v438_v30 }
 0x1b9   :  { %v162_v63 = vsub.f32 %v92_v43, %v145_v60  ;;  %v163_v0 = vsub.f32 %v93_v38, %v149_v61  ;;  %v164_v4 = vsub.f32 %v94_v45, %v153_v62  ;;  %v165_v7 = vsub.f32 %v95_v46, %v157_v2 }
 0x1bb   :  { %v166_v1 = vmul.f32 1.442695, %v162_v63  ;;  %v168_v6 = vmul.f32 1.442695, %v163_v0  ;;  %v170_v10 = vmul.f32 1.442695, %v164_v4 }
 0x1bc   :  { %v172_v11 = vmul.f32 1.442695, %v165_v7 }
 0x1bd   :  { %323 = vpow2.f32 %v166_v1 }
 0x1be   :  { %325 = vpow2.f32 %v168_v6 }
 0x1bf   :  { %327 = vpow2.f32 %v170_v10 }
 0x1c0   :  { %329 = vpow2.f32 %v172_v11 }
 0x1c7   :  { %v324_v12 = vpop.eup %323 }
 0x1c8   :  { %179 = vperm.xlu0 %322, %v324_v12   ;;  %v326_v13 = vpop.eup %325 }
 0x1c9   :  { %v328_v14 = vpop.eup %327 }
 0x1ca   :  { %v330_v15 = vpop.eup %329 }
 0x1cc   :  { %182 = vperm.xlu0 %322, %v326_v13  }
 0x1d0   :  { %185 = vperm.xlu0 %322, %v328_v14  }
 0x1d4   :  { %188 = vperm.xlu0 %322, %v330_v15  }
 0x247   :  { %v180_v16 = vpop.permute.xlu0 %179 }
 0x248   :  { %v193_v24 = vrot.slane %v180_v16, %v428_v20 }
 0x24b   :  { %v183_v17 = vpop.permute.xlu0 %182 }
 0x24c   :  { %v197_v19 = vrot.slane %v183_v17, %v428_v20 }
 0x24e   :  { %v206_v27 = vsel %vm130_vm6, %v197_v19, %v193_v24 }
 0x24f   :  { %v186_v18 = vpop.permute.xlu0 %185 }
 0x250   :  { %v201_v21 = vrot.slane %v186_v18, %v428_v20 }
 0x252   :  { %v207_v29 = vsel %vm132_vm7, %v201_v21, %v206_v27 }
 0x253   :  { %v189_v26 = vpop.permute.xlu0 %188 }
 0x254   :  { %v205_v28 = vrot.slane %v189_v26, %v428_v20 }
 0x256   :  { %v208_v31 = vsel %vm134_vm8, %v205_v28, %v207_v29 }
 0x257   :  { %v210_v32 = vsel %vm137_vm9, %v208_v31, 0.0 }
 0x258   :  { %211 = vadd.xlane.f32.xlu1 %v210_v32 }
 0x2e5   :  { %v212_v33 = vpop.xlane.xlu1 %211 }
 0x2e6   :  { %v217_v34 = vrot.slane %v212_v33, %v432_v23  ;;  %v221_v35 = vrot.slane %v212_v33, %v430_v22  ;;  %v225_v36 = vrot.slane %v212_v33, %v434_v25  ;;  %v229_v37 = vrot.slane %v212_v33, %v438_v30 }
 0x2e8   :  { %331 = vrcp.f32 %v217_v34 }
 0x2e9   :  { %333 = vrcp.f32 %v221_v35 }
 0x2ea   :  { %335 = vrcp.f32 %v225_v36 }
 0x2eb   :  { %337 = vrcp.f32 %v229_v37 }
 0x2f2   :  { %v332_v20 = vpop.eup %331 }
 0x2f3   :  { %v334_v38 = vpop.eup %333  ;;  %v235_v39 = vmul.f32 %v332_v20, %v324_v12 }
 0x2f4   :  { %v336_v40 = vpop.eup %335  ;;  %v237_v41 = vmul.f32 %v334_v38, %v326_v13 }
 0x2f5   :  { %244 = vperm.xlu0 %322, %v235_v39   ;;  %v239_v42 = vmul.f32 %v336_v40, %v328_v14  ;;  %v338_v43 = vpop.eup %337 }
 0x2f6   :  { %249 = vperm.xlu1 %321, %v237_v41   ;;  %v241_v23 = vmul.f32 %v338_v43, %v330_v15 }
 0x2f9   :  { %254 = vperm.xlu0 %322, %v239_v42  }
 0x2fd   :  { %259 = vperm.xlu0 %322, %v241_v23  }
 0x374   :  { %v245_v22 = vpop.permute.xlu0 %244 }
 0x375   :  { %v250_v25 = vpop.permute.xlu1 %249  ;;  %v262_v44 = vmul.f32 %v245_v22, %v414_v8 }
 0x376   :  { %v263_v30 = vmul.f32 %v250_v25, %v399_v3 }
 0x377   :  { %v266_v45 = vsel %vm35_vm1, %v262_v44, 0.0 }
 0x378   :  { %v273_v46 = vsel %vm35_vm1, %v263_v30, 0.0  ;;  %v267_v47 = vrot.slane %v266_v45, 4  ;;  %v255_v48 = vpop.permute.xlu0 %254 }
 0x379   :  { %v274_v49 = vrot.slane %v273_v46, 4  ;;  %v264_v50 = vmul.f32 %v255_v48, %v407_v5 }
 0x37a   :  { %v268_v51 = vadd.f32 %v267_v47, %v266_v45 }
 0x37b   :  { %v275_v52 = vadd.f32 %v274_v49, %v273_v46  ;;  %v280_v53 = vsel %vm35_vm1, %v264_v50, 0.0 }
 0x37c   :  { %v269_v54 = vrot.slane %v268_v51, 2  ;;  %v281_v55 = vrot.slane %v280_v53, 4  ;;  %v260_v56 = vpop.permute.xlu0 %259 }
 0x37d   :  { %v276_v57 = vrot.slane %v275_v52, 2  ;;  %v265_v8 = vmul.f32 %v260_v56, %v419_v9 }
 0x37e   :  { %v270_v3 = vadd.f32 %v269_v54, %v268_v51  ;;  %v282_v58 = vadd.f32 %v281_v55, %v280_v53 }
 0x37f   :  { %v277_v59 = vadd.f32 %v276_v57, %v275_v52  ;;  %v287_v60 = vsel %vm35_vm1, %v265_v8, 0.0 }
 0x380   :  { %v283_v61 = vrot.slane %v282_v58, 2  ;;  %v288_v62 = vrot.slane %v287_v60, 4  ;;  %v271_v0 = vrot.slane %v270_v3, 1 }
 0x381   :  { %v278_v63 = vrot.slane %v277_v59, 1 }
 0x382   :  { %v284_v5 = vadd.f32 %v283_v61, %v282_v58  ;;  %v289_v1 = vadd.f32 %v288_v62, %v287_v60  ;;  %v272_v7 = vadd.f32 %v271_v0, %v270_v3 }
 0x383   :  { %v279_v6 = vadd.f32 %v278_v63, %v277_v59 }
 0x384   :  { %v285_v2 = vrot.slane %v284_v5, 1  ;;  %v290_v4 = vrot.slane %v289_v1, 2 }
 0x385   :  { %v298_v13 = vsel %vm130_vm6, %v279_v6, %v272_v7 }
 0x386   :  { %v291_v10 = vadd.f32 %v290_v4, %v289_v1  ;;  %v286_v11 = vadd.f32 %v285_v2, %v284_v5 }
 0x388   :  { %v292_v12 = vrot.slane %v291_v10, 1  ;;  %v299_v14 = vsel %vm132_vm7, %v286_v11, %v298_v13 }
 0x38a   :  { %v293_v9 = vadd.f32 %v292_v12, %v291_v10 }
 0x38c   :  { %v300_v15 = vsel %vm134_vm8, %v293_v9, %v299_v14 }
 0x38d   :  { %302 = vst.msk [vmem:[#allocation2] sm:$0xf] %vm55_vm0, %v300_v15 }
 0x38e   :  { %350 = shalt.err (!%p347_p4)
}
 0x38f   :  { %s351_s30 = scalar_lea.hbm %s494_s4, 64 }
 0x390   :  { %p352_p5 = scmp.ne.s32.totalorder %s494_s4, %s351_s30  ;;  %p355_p6 = scmp.lt.u32.totalorder %s351_s30, %s494_s4 }
 0x392   :  { %p357_p7 = pnand %p355_p6, %p352_p5 }
 0x394   :  { %360 = shalt.err (!%p357_p7)
}
 0x395   :  { %312 = dma.vmem_to_hbm [thread:$0]  %s310_s2, 64, %s494_s4, [#allocation3]  }
 0x396   :  { %361 = dma.done.wait [#allocation3], 64  }
 0x397   :  { %362 = vsyncadd [#allocation3], 4294967232 }
 0x398   :  { %316 = vsyncpa [#allocation3], 1 }

</bundles_post_ra>
